<compile_context>
chip_gen: v6e
topology: v6e:2x2x1
jax: 0.10.0
libtpu: 0.0.40
codegen_flags: <defaults>
</compile_context>

<pallas_src>
import numpy as np
import jax
import jax.numpy as jnp
from jax.experimental import pallas as pl
from jax.experimental.pallas import tpu as pltpu

VOCAB = 4680  # fixed decoder output size in the PyTorch module


def _round_up(x, m):
    return ((x + m - 1) // m) * m


def _head_kernel(x_ref, w1_ref, b1_ref, w2_ref, o_ref):
    # First linear: (tm, H) @ (H, R) + (1, R) -> (tm, R)   (MXU + VPU add, f32 acc)
    h = jnp.dot(x_ref[...], w1_ref[...], preferred_element_type=jnp.float32)
    h = h + b1_ref[...]                       # broadcast bias over rows
    # Second linear (no bias): (tm, R) @ (R, Vp) -> (tm, Vp).  If W2 is bf16 we cast
    # h to match (f32 accumulation is kept via preferred_element_type).
    h = h.astype(w2_ref.dtype)
    out = jnp.dot(h, w2_ref[...], preferred_element_type=jnp.float32)
    o_ref[...] = out.astype(o_ref.dtype)


def dombert_domain_head(sequence_output, w1, b1, w2, *, tm=512,
                        compute_dtype=None, out_dtype=None):
    """DomBertDomainHead forward.

    sequence_output: (B, S, H)
    w1: (H, R)   -- reducer.weight^T,  R = H // 12
    b1: (R,)     -- reducer.bias
    w2: (R, V)   -- decoder.weight^T,  V = 4680
    tm: row tile (default 512; sized for the 48 MiB VMEM budget below).
    compute_dtype: optional dtype for the second matmul operands (e.g. jnp.bfloat16
        on v6e/v7x); accumulation stays f32.
    out_dtype: output dtype (default: dtype of sequence_output).
    """
    B, S, H = sequence_output.shape
    H_w, R = w1.shape
    assert H_w == H, "reducer weight does not match hidden size"
    R_w, V = w2.shape
    assert R_w == R, "decoder weight does not match reducer output size"
    out_dtype = sequence_output.dtype if out_dtype is None else out_dtype

    M = B * S
    # Row tile: multiple of 8 (sublane), never larger than the (rounded-up) row count.
    tm_eff = min(tm, _round_up(M, 8))
    M_pad = _round_up(M, tm_eff)
    # Lane-dense output: pad V up to a multiple of 128 with zero weight columns.
    V_pad = _round_up(V, 128)

    x2d = sequence_output.reshape(M, H)
    if M_pad != M:
        x2d = jnp.pad(x2d, ((0, M_pad - M), (0, 0)))
    if V_pad != V:
        w2 = jnp.pad(w2, ((0, 0), (0, V_pad - V)))
    if compute_dtype is not None and w2.dtype != compute_dtype:
        w2 = w2.astype(compute_dtype)
    b1_2d = b1.reshape(1, R)

    # --- scheduling hints -----------------------------------------------------
    out_itemsize = int(np.dtype(out_dtype).itemsize)
    flops = 2 * M_pad * (H * R + R * V_pad)
    bytes_accessed = int(
        x2d.size * x2d.dtype.itemsize
        + w1.size * w1.dtype.itemsize
        + b1_2d.size * b1_2d.dtype.itemsize
        + w2.size * w2.dtype.itemsize
        + M_pad * V_pad * out_itemsize
    )
    cost = pl.CostEstimate(flops=int(flops), transcendentals=0,
                           bytes_accessed=bytes_accessed)

    # Explicit VMEM budget: double-buffered output + activation tiles, plus the
    # (grid-invariant but still 2x-buffered) weights.  Clamp to 48 MiB so it works
    # on v5e (128 MiB phys, 16 MiB default scoped) and v7x (64 MiB phys).
    vmem_needed = 2 * (
        tm_eff * V_pad * out_itemsize
        + tm_eff * H * x2d.dtype.itemsize
        + w1.size * w1.dtype.itemsize
        + b1_2d.size * b1_2d.dtype.itemsize
        + w2.size * w2.dtype.itemsize
    )
    vmem_limit = int(min(max(vmem_needed + (8 << 20), 32 << 20), 48 << 20))

    out2d = pl.pallas_call(
        _head_kernel,
        out_shape=jax.ShapeDtypeStruct((M_pad, V_pad), out_dtype),
        grid_spec=pltpu.PrefetchScalarGridSpec(
            num_scalar_prefetch=0,
            grid=(M_pad // tm_eff,),
            in_specs=[
                pl.BlockSpec((tm_eff, H), lambda i: (i, 0)),   # row tile of activations
                pl.BlockSpec((H, R), lambda i: (0, 0)),        # full reducer weight (invariant)
                pl.BlockSpec((1, R), lambda i: (0, 0)),        # reducer bias (invariant)
                pl.BlockSpec((R, V_pad), lambda i: (0, 0)),    # full (padded) decoder weight
            ],
            out_specs=pl.BlockSpec((tm_eff, V_pad), lambda i: (i, 0)),
        ),
        compiler_params=pltpu.CompilerParams(
            dimension_semantics=("parallel",),   # shards rows across v7x's 2 TCs
            vmem_limit_bytes=vmem_limit,
        ),
        cost_estimate=cost,
    )(x2d, w1, b1_2d, w2)

    # Strip row / lane padding and restore (B, S, V).
    return out2d[:M, :V].reshape(B, S, V)


if __name__ == "__main__":
    # Small shapes consistent with the module: hidden_size must be divisible by 12.
    B, S, H = 2, 8, 96
    R = H // 12  # 8

    key = jax.random.PRNGKey(0)
    k_x, k_w1, k_b1, k_w2 = jax.random.split(key, 4)

    sequence_output = jax.random.normal(k_x, (B, S, H), dtype=jnp.float32)
    # Deterministic synthetic parameters (stand-in for nn.Linear weights).
    w1 = jax.random.normal(k_w1, (H, R), dtype=jnp.float32) * 0.02      # reducer.weight^T
    b1 = jax.random.normal(k_b1, (R,), dtype=jnp.float32) * 0.02        # reducer.bias
    w2 = jax.random.normal(k_w2, (R, VOCAB), dtype=jnp.float32) * 0.02  # decoder.weight^T

    # Pure-JAX reference of the same forward pass.
    ref = ((sequence_output.reshape(-1, H) @ w1 + b1) @ w2).reshape(B, S, VOCAB)

    # 1) Default f32 path (tight tolerance).
    out = jax.block_until_ready(dombert_domain_head(sequence_output, w1, b1, w2))
    assert out.shape == (B, S, VOCAB)
    assert jnp.allclose(out, ref, atol=1e-4, rtol=1e-4)

    # 2) Row-padding path: M = B*S not a multiple of the row tile / sublane count.
    S2 = 7
    x2 = sequence_output[:, :S2, :]
    ref2 = ((x2.reshape(-1, H) @ w1 + b1) @ w2).reshape(B, S2, VOCAB)
    out2 = jax.block_until_ready(dombert_domain_head(x2, w1, b1, w2))
    assert out2.shape == (B, S2, VOCAB)
    assert jnp.allclose(out2, ref2, atol=1e-4, rtol=1e-4)

    # 3) bf16 decoder-weight path (perf option for v6e/v7x), looser tolerance.
    out_bf16 = jax.block_until_ready(
        dombert_domain_head(sequence_output, w1, b1, w2, compute_dtype=jnp.bfloat16))
    assert out_bf16.shape == (B, S, VOCAB)
    assert jnp.allclose(out_bf16, ref, atol=3e-2, rtol=3e-2)

    print("KERNEL_OK")
</pallas_src>

<mosaic_0001>
module attributes {stable_mosaic.version = 11 : i64} {
  func.func @_head_kernel(%arg0: i32, %arg1: memref<16x96xf32, #tpu.memory_space<vmem>>, %arg2: memref<96x8xf32, #tpu.memory_space<vmem>>, %arg3: memref<1x8xf32, #tpu.memory_space<vmem>>, %arg4: memref<8x4736xf32, #tpu.memory_space<vmem>>, %arg5: memref<16x4736xf32, #tpu.memory_space<vmem>>) attributes {dimension_semantics = [#tpu.dimension_semantics<parallel>], iteration_bounds = array<i64: 1>, scalar_prefetch = 0 : i64, scratch_operands = 0 : i64, tpu.core_type = #tpu.core_type<tc>, window_params = [{transform_indices = @transform_0, window_bounds = array<i64: 16, 96>}, {pipeline_mode = #tpu.pipeline_mode<synchronous>, transform_indices = @transform_1, window_bounds = array<i64: 96, 8>}, {pipeline_mode = #tpu.pipeline_mode<synchronous>, transform_indices = @transform_2, window_bounds = array<i64: 1, 8>}, {pipeline_mode = #tpu.pipeline_mode<synchronous>, transform_indices = @transform_3, window_bounds = array<i64: 8, 4736>}, {transform_indices = @transform_4, window_bounds = array<i64: 16, 4736>}]} {
    %c0 = arith.constant 0 : index
    %c0_0 = arith.constant 0 : index
    %0 = vector.load %arg1[%c0, %c0_0] : memref<16x96xf32, #tpu.memory_space<vmem>>, vector<16x96xf32>
    %c0_1 = arith.constant 0 : index
    %c0_2 = arith.constant 0 : index
    %1 = vector.load %arg2[%c0_1, %c0_2] : memref<96x8xf32, #tpu.memory_space<vmem>>, vector<96x8xf32>
    %cst = arith.constant dense<0.000000e+00> : vector<16x8xf32>
    %2 = tpu.matmul %0, %1, %cst {dimension_numbers = #tpu.dot_dimension_numbers<[1], [0], [0], [1], [0, 0, 1, 1], [], []>} : vector<16x96xf32>, vector<96x8xf32>, vector<16x8xf32> -> vector<16x8xf32>
    %c0_3 = arith.constant 0 : index
    %c0_4 = arith.constant 0 : index
    %3 = vector.load %arg3[%c0_3, %c0_4] : memref<1x8xf32, #tpu.memory_space<vmem>>, vector<1x8xf32>
    %4 = vector.broadcast %3 : vector<1x8xf32> to vector<16x8xf32>
    %5 = arith.addf %2, %4 : vector<16x8xf32>
    %c0_5 = arith.constant 0 : index
    %c0_6 = arith.constant 0 : index
    %6 = vector.load %arg4[%c0_5, %c0_6] : memref<8x4736xf32, #tpu.memory_space<vmem>>, vector<8x4736xf32>
    %cst_7 = arith.constant dense<0.000000e+00> : vector<16x4736xf32>
    %7 = tpu.matmul %5, %6, %cst_7 {dimension_numbers = #tpu.dot_dimension_numbers<[1], [0], [0], [1], [0, 0, 1, 1], [], []>} : vector<16x8xf32>, vector<8x4736xf32>, vector<16x4736xf32> -> vector<16x4736xf32>
    %c0_8 = arith.constant 0 : index
    %c0_9 = arith.constant 0 : index
    %8 = vector.load %arg5[%c0_8, %c0_9] : memref<16x4736xf32, #tpu.memory_space<vmem>>, vector<16x4736xf32>
    tpu.vector_store %arg5[%c0_8, %c0_9], %7 {strides = array<i32>} : memref<16x4736xf32, #tpu.memory_space<vmem>>, vector<16x4736xf32>,
    return
  }
  func.func @transform_0(%arg0: i32) -> (i32, i32) {
    %c0_i32 = arith.constant 0 : i32
    %c0_i32_0 = arith.constant 0 : i32
    return %arg0, %c0_i32 : i32, i32
  }
  func.func @transform_1(%arg0: i32) -> (i32, i32) {
    %c0_i32 = arith.constant 0 : i32
    %c0_i32_0 = arith.constant 0 : i32
    %c0_i32_1 = arith.constant 0 : i32
    return %c0_i32, %c0_i32_0 : i32, i32
  }
  func.func @transform_2(%arg0: i32) -> (i32, i32) {
    %c0_i32 = arith.constant 0 : i32
    %c0_i32_0 = arith.constant 0 : i32
    %c0_i32_1 = arith.constant 0 : i32
    return %c0_i32, %c0_i32_0 : i32, i32
  }
  func.func @transform_3(%arg0: i32) -> (i32, i32) {
    %c0_i32 = arith.constant 0 : i32
    %c0_i32_0 = arith.constant 0 : i32
    %c0_i32_1 = arith.constant 0 : i32
    return %c0_i32, %c0_i32_0 : i32, i32
  }
  func.func @transform_4(%arg0: i32) -> (i32, i32) {
    %c0_i32 = arith.constant 0 : i32
    %c0_i32_0 = arith.constant 0 : i32
    return %arg0, %c0_i32 : i32, i32
  }
}

</mosaic_0001>

<bundles_post_ra>
// kernel: tpu_custom_call.1
= control target key start
LH: loop header
LB: loop body
LE: loop exit
PB: predicated region body
PF: predicated region fallthrough
CT: control target
= control target key end

     0   :  { %9 = vsyncpa [#allocation3], 0  ;;  %s2067_s0 = inlined_call_operand.vmem [shape: f32[16,96], index: 0, kind: input, shape index: {}]   ;;  %s2068_s1 = inlined_call_operand.vmem [shape: f32[96,8], index: 1, kind: input, shape index: {}]   ;;  %s2069_s2 = inlined_call_operand.vmem [shape: f32[1,8], index: 2, kind: input, shape index: {}]   ;;  %s2070_s3 = inlined_call_operand.hbm [shape: f32[8,4736], index: 3, kind: input, shape index: {}]   ;;  %s2071_s4 = inlined_call_operand.hbm [shape: f32[16,4736], index: 4, kind: output, shape index: {}]  }
   0x1   :  { %10 = vsyncpa [#allocation4], 0  ;;  %s1868_s15 = smov [#allocation2]  }
   0x2   :  { %s23_s16 = sshll.u32 %s1868_s15, 4  ;;  %s24_s16 = int_to_ptr.vmem [resolvable:$true] %s23_s16 }
   0x3   :  { %s1832_s17 = scalar_lea.vmem %s24_s16, 4736  ;;  %p1837_p1 = scmp.lt.s32.totalorder %s24_s16, %s24_s16 }
   0x4   :  { %p1833_p0 = scmp.ne.s32.totalorder %s24_s16, %s1832_s17  ;;  %p1838_p2 = scmp.lt.s32.totalorder %s1832_s17, %s1832_s17 }
   0x6   :  { %p1839_p3 = por %p1838_p2, %p1837_p1 }
   0x8   :  { %p1840_p4 = pnand %p1839_p3, %p1833_p0 }
   0xa   :  { %1843 = shalt.err (!%p1840_p4)
}
   0xb   :  { %26 = dma.hbm_to_vmem [thread:$0]  %s2070_s3, 4736, %s24_s16, [#allocation3]  }
   0xc   :  { %1864 = dma.done.wait [#allocation3], 4736  }
   0xd   :  { %1865 = vsyncadd [#allocation3], 4294962560  ;;  %v43_v0 = vld [vmem:[%s2068_s1 + $0x58] sm:$0xff]  ;;  %v42_v1 = vld [vmem:[%s2068_s1 + $0x50] sm:$0xff]  ;;  %vm51_vm0 = vcmask 785408   ;;  %v1869_v19 = vmov 0.0  }
   0xe   :  { %1787 = vmatprep.subr.mxu0 %v43_v0  ;;  %v41_v2 = vld [vmem:[%s2068_s1 + $0x48] sm:$0xff]  ;;  %v40_v3 = vld [vmem:[%s2068_s1 + $0x40] sm:$0xff]  ;;  %v39_v5 = vld [vmem:[%s2068_s1 + $0x38] sm:$0xff]  ;;  %241 = vmatprep.mubr.f32.mxu1 %v1869_v19  ;;  %vm170_vm1 = vcmask 64512  }
   0xf   :  { %1788 = vmatpush3.msra.mxu0 %v43_v0  ;;  %v30_v4 = vld [vmem:[%s2067_s0] sm:$0xff]  ;;  %v38_v6 = vld [vmem:[%s2068_s1 + $0x30] sm:$0xff]  ;;  %v37_v7 = vld [vmem:[%s2068_s1 + $0x28] sm:$0xff] }
  0x10   :  { %1789 = vmatprep.subr.mxu0 %v42_v1  ;;  %1811 = vmatprep.mubr.msk.f32.mxu0 %vm51_vm0, %v30_v4  ;;  %v36_v8 = vld [vmem:[%s2068_s1 + $0x20] sm:$0xff]  ;;  %v35_v9 = vld [vmem:[%s2068_s1 + $0x18] sm:$0xff]  ;;  %v34_v10 = vld [vmem:[%s2068_s1 + $0x10] sm:$0xff] }
  0x11   :  { %1790 = vmatpush3.msra.mxu0 %v42_v1  ;;  %v33_v11 = vld [vmem:[%s2068_s1 + $0x8] sm:$0xff]  ;;  %v32_v12 = vld [vmem:[%s2068_s1] sm:$0xff]  ;;  %v136_v17 = vld [vmem:[#allocation2 + $0x18] sm:$0xff] }
  0x12   :  { %1791 = vmatprep.subr.mxu0 %v41_v2  ;;  %v31_v13 = vld [vmem:[%s2067_s0 + $0x8] sm:$0xff]  ;;  %v133_v16 = vld [vmem:[#allocation2] sm:$0xff]  ;;  %v135_v25 = vld [vmem:[#allocation2 + $0x10] sm:$0xff] }
  0x13   :  { %1792 = vmatpush3.msra.mxu0 %v41_v2  ;;  %v134_v14 = vld [vmem:[#allocation2 + $0x8] sm:$0xff]  ;;  %v141_v18 = vld [vmem:[#allocation2 + $0x40] sm:$0xff]  ;;  %v140_v31 = vld [vmem:[#allocation2 + $0x38] sm:$0xff] }
  0x14   :  { %1793 = vmatprep.subr.mxu0 %v40_v3  ;;  %v142_v15 = vld [vmem:[#allocation2 + $0x48] sm:$0xff]  ;;  %207 = vmatprep.subr.mxu1 %v134_v14  ;;  %v1729_v22 = vld [vmem:[%s2069_s2] ss:$0 sm:$0xff]  ;;  %v139_v34 = vld [vmem:[#allocation2 + $0x30] sm:$0xff]  ;;  %s1870_s2 = smov [#allocation5]  }
  0x15   :  { %1794 = vmatpush3.msra.mxu0 %v40_v3  ;;  %208 = vmatpush1.msra.mxu1 %v133_v16  ;;  %v146_v20 = vld [vmem:[#allocation2 + $0x68] sm:$0xff]  ;;  %v145_v27 = vld [vmem:[#allocation2 + $0x60] sm:$0xff]  ;;  %v144_v35 = vld [vmem:[#allocation2 + $0x58] sm:$0xff]  ;;  %s1717_s21 = sshll.u32 %s1870_s2, 4  ;;  %s1718_s21 = int_to_ptr.vmem [resolvable:$true] %s1717_s21 }
  0x16   :  { %1795 = vmatprep.subr.mxu0 %v39_v5  ;;  %284 = vmatprep.subr.mxu1 %v136_v17  ;;  %v138_v26 = vld [vmem:[#allocation2 + $0x28] sm:$0xff]  ;;  %v137_v30 = vld [vmem:[#allocation2 + $0x20] sm:$0xff]  ;;  %v143_v38 = vld [vmem:[#allocation2 + $0x50] sm:$0xff]  ;;  %s1844_s22 = scalar_lea.vmem %s1718_s21, 9472  ;;  %p1849_p6 = scmp.lt.s32.totalorder %s1718_s21, %s1718_s21 }
  0x17   :  { %1796 = vmatpush3.msra.mxu0 %v39_v5  ;;  %v150_v29 = vld [vmem:[#allocation2 + $0x88] sm:$0xff]  ;;  %v149_v32 = vld [vmem:[#allocation2 + $0x80] sm:$0xff]  ;;  %v148_v39 = vld [vmem:[#allocation2 + $0x78] sm:$0xff]  ;;  %p1845_p5 = scmp.ne.s32.totalorder %s1718_s21, %s1844_s22  ;;  %p1850_p7 = scmp.lt.s32.totalorder %s1844_s22, %s1844_s22 }
  0x18   :  { %1797 = vmatprep.subr.mxu0 %v38_v6  ;;  %v154_v33 = vld [vmem:[#allocation2 + $0xa8] sm:$0xff]  ;;  %v153_v36 = vld [vmem:[#allocation2 + $0xa0] sm:$0xff]  ;;  %v147_v42 = vld [vmem:[#allocation2 + $0x70] sm:$0xff] }
  0x19   :  { %1798 = vmatpush3.msra.mxu0 %v38_v6  ;;  %v158_v37 = vld [vmem:[#allocation2 + $0xc8] sm:$0xff]  ;;  %v157_v40 = vld [vmem:[#allocation2 + $0xc0] sm:$0xff]  ;;  %v152_v43 = vld [vmem:[#allocation2 + $0x98] sm:$0xff]  ;;  %p1851_p8 = por %p1850_p7, %p1849_p6 }
  0x1a   :  { %1799 = vmatprep.subr.mxu0 %v37_v7  ;;  %v162_v41 = vld [vmem:[#allocation2 + $0xe8] sm:$0xff]  ;;  %v161_v44 = vld [vmem:[#allocation2 + $0xe0] sm:$0xff]  ;;  %v151_v46 = vld [vmem:[#allocation2 + $0x90] sm:$0xff] }
  0x1b   :  { %1800 = vmatpush3.msra.mxu0 %v37_v7  ;;  %v166_v45 = vld [vmem:[#allocation2 + $0x108] sm:$0xff]  ;;  %v156_v47 = vld [vmem:[#allocation2 + $0xb8] sm:$0xff]  ;;  %v165_v48 = vld [vmem:[#allocation2 + $0x100] sm:$0xff]  ;;  %p1852_p9 = pnand %p1851_p8, %p1845_p5 }
  0x1c   :  { %1801 = vmatprep.subr.mxu0 %v36_v8  ;;  %v169_v49 = vld [vmem:[#allocation2 + $0x120] sm:$0xff]  ;;  %v155_v50 = vld [vmem:[#allocation2 + $0xb0] sm:$0xff]  ;;  %v160_v51 = vld [vmem:[#allocation2 + $0xd8] sm:$0xff] }
  0x1d   :  { %1802 = vmatpush3.msra.mxu0 %v36_v8  ;;  %v159_v52 = vld [vmem:[#allocation2 + $0xd0] sm:$0xff]  ;;  %v164_v53 = vld [vmem:[#allocation2 + $0xf8] sm:$0xff] }
  0x1e   :  { %1803 = vmatprep.subr.mxu0 %v35_v9  ;;  %v163_v54 = vld [vmem:[#allocation2 + $0xf0] sm:$0xff]  ;;  %v168_v55 = vld [vmem:[#allocation2 + $0x118] sm:$0xff] }
  0x1f   :  { %1804 = vmatpush3.msra.mxu0 %v35_v9  ;;  %v167_v56 = vld [vmem:[#allocation2 + $0x110] sm:$0xff] }
  0x20   :  { %1805 = vmatprep.subr.mxu0 %v34_v10 }
  0x21   :  { %1806 = vmatpush3.msra.mxu0 %v34_v10 }
  0x22   :  { %1807 = vmatprep.subr.mxu0 %v33_v11 }
  0x23   :  { %1808 = vmatpush3.msra.mxu0 %v33_v11 }
  0x24   :  { %1809 = vmatprep.subr.mxu0 %v32_v12 }
  0x25   :  { %1810 = vmatpush3.msra.mxu0 %v32_v12 }
  0x26   :  { %1812 = vmatmul.mubr.msk.f32.vlgmr.msra.gmra.mxu0 %vm51_vm0, %v31_v13  ;;  %515 = vmatprep.subr.mxu0 %v142_v15 }
  0x27   :  { %516 = vmatpush1.msra.mxu0 %v141_v18  ;;  %549 = vmatprep.mubr.f32.mxu0 %v1869_v19 }
  0x28   :  { %669 = vmatprep.subr.mxu0 %v146_v20 }
  0xe6   :  { %v1813_v21 = vpop.f32.mrf.mxu0 }
  0xe7   :  { %v1957_v28 = vadd.f32 %v1813_v21, %v1729_v22 }
  0xe8   :  { %v124_v23 = vpop.f32.mrf.mxu0 }
  0xe9   :  { %v1950_v24 = vadd.f32 %v1729_v22, %v124_v23 }
  0xeb   :  { %1732 = vmatmul.mubr.msk.f32.vlgmr.msra.gmra.mxu1 %vm170_vm1, %v1950_v24  ;;  %1740 = vmatmul.mubr.msk.f32.vlgmr.msra.gmra.mxu0 %vm170_vm1, %v1950_v24 }
  0xec   :  { %285 = vmatpush1.msra.mxu1 %v135_v25  ;;  %247 = vmatprep.mubr.f32.mxu1 %v1869_v19 }
  0xed   :  { %555 = vmatprep.mubr.f32.mxu0 %v1869_v19  ;;  %361 = vmatprep.subr.mxu1 %v138_v26 }
  0xee   :  { %670 = vmatpush1.msra.mxu0 %v145_v27 }
  0xef   :  { %1733 = vmatmul.mubr.msk.f32.gmra.mxu1 %vm170_vm1, %v1957_v28  ;;  %1741 = vmatmul.mubr.msk.f32.gmra.mxu0 %vm170_vm1, %v1957_v28 }
  0xf0   :  { %318 = vmatprep.mubr.f32.mxu1 %v1869_v19  ;;  %703 = vmatprep.mubr.f32.mxu0 %v1869_v19 }
  0xf1   :  { %823 = vmatprep.subr.mxu0 %v150_v29 }
  0xf3   :  { %1734 = vmatmul.mubr.msk.f32.vlgmr.msra.gmra.mxu1 %vm170_vm1, %v1950_v24  ;;  %1744 = vmatmul.mubr.msk.f32.vlgmr.msra.gmra.mxu0 %vm170_vm1, %v1950_v24 }
  0xf4   :  { %362 = vmatpush1.msra.mxu1 %v137_v30  ;;  %324 = vmatprep.mubr.f32.mxu1 %v1869_v19 }
  0xf5   :  { %709 = vmatprep.mubr.f32.mxu0 %v1869_v19  ;;  %438 = vmatprep.subr.mxu1 %v140_v31 }
  0xf6   :  { %824 = vmatpush1.msra.mxu0 %v149_v32 }
  0xf7   :  { %1735 = vmatmul.mubr.msk.f32.gmra.mxu1 %vm170_vm1, %v1957_v28  ;;  %1745 = vmatmul.mubr.msk.f32.gmra.mxu0 %vm170_vm1, %v1957_v28 }
  0xf8   :  { %395 = vmatprep.mubr.f32.mxu1 %v1869_v19  ;;  %857 = vmatprep.mubr.f32.mxu0 %v1869_v19 }
  0xf9   :  { %977 = vmatprep.subr.mxu0 %v154_v33 }
  0xfb   :  { %1736 = vmatmul.mubr.msk.f32.vlgmr.msra.gmra.mxu1 %vm170_vm1, %v1950_v24  ;;  %1748 = vmatmul.mubr.msk.f32.vlgmr.msra.gmra.mxu0 %vm170_vm1, %v1950_v24 }
  0xfc   :  { %439 = vmatpush1.msra.mxu1 %v139_v34  ;;  %401 = vmatprep.mubr.f32.mxu1 %v1869_v19 }
  0xfd   :  { %863 = vmatprep.mubr.f32.mxu0 %v1869_v19  ;;  %592 = vmatprep.subr.mxu1 %v144_v35 }
  0xfe   :  { %978 = vmatpush1.msra.mxu0 %v153_v36 }
  0xff   :  { %1737 = vmatmul.mubr.msk.f32.gmra.mxu1 %vm170_vm1, %v1957_v28  ;;  %1749 = vmatmul.mubr.msk.f32.gmra.mxu0 %vm170_vm1, %v1957_v28 }
 0x100   :  { %472 = vmatprep.mubr.f32.mxu1 %v1869_v19  ;;  %1011 = vmatprep.mubr.f32.mxu0 %v1869_v19 }
 0x101   :  { %1131 = vmatprep.subr.mxu0 %v158_v37 }
 0x103   :  { %1738 = vmatmul.mubr.msk.f32.vlgmr.msra.gmra.mxu1 %vm170_vm1, %v1950_v24  ;;  %1752 = vmatmul.mubr.msk.f32.vlgmr.msra.gmra.mxu0 %vm170_vm1, %v1950_v24 }
 0x104   :  { %593 = vmatpush1.msra.mxu1 %v143_v38  ;;  %478 = vmatprep.mubr.f32.mxu1 %v1869_v19 }
 0x105   :  { %1017 = vmatprep.mubr.f32.mxu0 %v1869_v19  ;;  %746 = vmatprep.subr.mxu1 %v148_v39 }
 0x106   :  { %1132 = vmatpush1.msra.mxu0 %v157_v40 }
 0x107   :  { %1739 = vmatmul.mubr.msk.f32.gmra.mxu1 %vm170_vm1, %v1957_v28  ;;  %1753 = vmatmul.mubr.msk.f32.gmra.mxu0 %vm170_vm1, %v1957_v28 }
 0x108   :  { %626 = vmatprep.mubr.f32.mxu1 %v1869_v19  ;;  %1165 = vmatprep.mubr.f32.mxu0 %v1869_v19 }
 0x109   :  { %1285 = vmatprep.subr.mxu0 %v162_v41 }
 0x10b   :  { %1742 = vmatmul.mubr.msk.f32.vlgmr.msra.gmra.mxu1 %vm170_vm1, %v1950_v24  ;;  %1756 = vmatmul.mubr.msk.f32.vlgmr.msra.gmra.mxu0 %vm170_vm1, %v1950_v24 }
 0x10c   :  { %747 = vmatpush1.msra.mxu1 %v147_v42  ;;  %632 = vmatprep.mubr.f32.mxu1 %v1869_v19 }
 0x10d   :  { %1171 = vmatprep.mubr.f32.mxu0 %v1869_v19  ;;  %900 = vmatprep.subr.mxu1 %v152_v43 }
 0x10e   :  { %1286 = vmatpush1.msra.mxu0 %v161_v44 }
 0x10f   :  { %1743 = vmatmul.mubr.msk.f32.gmra.mxu1 %vm170_vm1, %v1957_v28  ;;  %1757 = vmatmul.mubr.msk.f32.gmra.mxu0 %vm170_vm1, %v1957_v28 }
 0x110   :  { %780 = vmatprep.mubr.f32.mxu1 %v1869_v19  ;;  %1319 = vmatprep.mubr.f32.mxu0 %v1869_v19 }
 0x111   :  { %1439 = vmatprep.subr.mxu0 %v166_v45 }
 0x113   :  { %1746 = vmatmul.mubr.msk.f32.vlgmr.msra.gmra.mxu1 %vm170_vm1, %v1950_v24  ;;  %1760 = vmatmul.mubr.msk.f32.vlgmr.msra.gmra.mxu0 %vm170_vm1, %v1950_v24 }
 0x114   :  { %901 = vmatpush1.msra.mxu1 %v151_v46  ;;  %786 = vmatprep.mubr.f32.mxu1 %v1869_v19 }
 0x115   :  { %1325 = vmatprep.mubr.f32.mxu0 %v1869_v19  ;;  %1054 = vmatprep.subr.mxu1 %v156_v47 }
 0x116   :  { %1440 = vmatpush1.msra.mxu0 %v165_v48 }
 0x117   :  { %1747 = vmatmul.mubr.msk.f32.gmra.mxu1 %vm170_vm1, %v1957_v28  ;;  %1761 = vmatmul.mubr.msk.f32.gmra.mxu0 %vm170_vm1, %v1957_v28 }
 0x118   :  { %934 = vmatprep.mubr.f32.mxu1 %v1869_v19  ;;  %1473 = vmatprep.mubr.f32.mxu0 %v1869_v19 }
 0x119   :  { %1814 = vmatprep.subr.mxu0 %v169_v49 }
 0x11b   :  { %1750 = vmatmul.mubr.msk.f32.vlgmr.msra.gmra.mxu1 %vm170_vm1, %v1950_v24  ;;  %1764 = vmatmul.mubr.msk.f32.vlgmr.msra.gmra.mxu0 %vm170_vm1, %v1950_v24 }
 0x11c   :  { %1055 = vmatpush1.msra.mxu1 %v155_v50  ;;  %940 = vmatprep.mubr.f32.mxu1 %v1869_v19 }
 0x11d   :  { %1479 = vmatprep.mubr.f32.mxu0 %v1869_v19  ;;  %1208 = vmatprep.subr.mxu1 %v160_v51 }
 0x11e   :  { %1815 = vmatpush3.msra.mxu0 %v169_v49 }
 0x11f   :  { %1751 = vmatmul.mubr.msk.f32.gmra.mxu1 %vm170_vm1, %v1957_v28  ;;  %1765 = vmatmul.mubr.msk.f32.gmra.mxu0 %vm170_vm1, %v1957_v28 }
 0x120   :  { %1816 = vmatprep.mubr.msk.f32.mxu0 %vm170_vm1, %v1950_v24  ;;  %1088 = vmatprep.mubr.f32.mxu1 %v1869_v19 }
 0x123   :  { %1754 = vmatmul.mubr.msk.f32.vlgmr.msra.gmra.mxu1 %vm170_vm1, %v1950_v24  ;;  %1817 = vmatmul.mubr.msk.f32.vlgmr.msra.gmra.mxu0 %vm170_vm1, %v1957_v28 }
 0x124   :  { %1209 = vmatpush1.msra.mxu1 %v159_v52  ;;  %1094 = vmatprep.mubr.f32.mxu1 %v1869_v19 }
 0x125   :  { %1362 = vmatprep.subr.mxu1 %v164_v53 }
 0x127   :  { %1755 = vmatmul.mubr.msk.f32.gmra.mxu1 %vm170_vm1, %v1957_v28 }
 0x128   :  { %1242 = vmatprep.mubr.f32.mxu1 %v1869_v19 }
 0x12b   :  { %1758 = vmatmul.mubr.msk.f32.vlgmr.msra.gmra.mxu1 %vm170_vm1, %v1950_v24 }
 0x12c   :  { %1363 = vmatpush1.msra.mxu1 %v163_v54  ;;  %1248 = vmatprep.mubr.f32.mxu1 %v1869_v19 }
 0x12d   :  { %1516 = vmatprep.subr.mxu1 %v168_v55 }
 0x12f   :  { %1759 = vmatmul.mubr.msk.f32.gmra.mxu1 %vm170_vm1, %v1957_v28 }
 0x130   :  { %1396 = vmatprep.mubr.f32.mxu1 %v1869_v19 }
 0x133   :  { %1762 = vmatmul.mubr.msk.f32.vlgmr.msra.gmra.mxu1 %vm170_vm1, %v1950_v24 }
 0x134   :  { %1517 = vmatpush1.msra.mxu1 %v167_v56  ;;  %1402 = vmatprep.mubr.f32.mxu1 %v1869_v19 }
 0x137   :  { %1763 = vmatmul.mubr.msk.f32.gmra.mxu1 %vm170_vm1, %v1957_v28 }
 0x138   :  { %1550 = vmatprep.mubr.f32.mxu1 %v1869_v19 }
 0x13b   :  { %1766 = vmatmul.mubr.msk.f32.vlgmr.msra.gmra.mxu1 %vm170_vm1, %v1950_v24 }
 0x13c   :  { %1556 = vmatprep.mubr.f32.mxu1 %v1869_v19 }
 0x13f   :  { %1767 = vmatmul.mubr.msk.f32.gmra.mxu1 %vm170_vm1, %v1957_v28 }
 0x1ab   :  { %v243_v57 = vpop.f32.mrf.mxu1  ;;  %v551_v58 = vpop.f32.mrf.mxu0 }
 0x1ac   :  { %1638 = vst [vmem:[#allocation5] sm:$0xff] %v243_v57  ;;  %1646 = vst [vmem:[#allocation5 + $0x40] sm:$0xff] %v551_v58 }
 0x1ad   :  { %v245_v59 = vpop.f32.mrf.mxu1  ;;  %v553_v60 = vpop.f32.mrf.mxu0 }
 0x1ae   :  { %1639 = vst [vmem:[#allocation5 + $0x8] sm:$0xff] %v245_v59  ;;  %1647 = vst [vmem:[#allocation5 + $0x48] sm:$0xff] %v553_v60 }
 0x1af   :  { %v249_v61 = vpop.f32.mrf.mxu1  ;;  %v557_v62 = vpop.f32.mrf.mxu0 }
 0x1b0   :  { %1675 = vst [vmem:[#allocation5 + $0x128] sm:$0xff] %v249_v61  ;;  %1683 = vst [vmem:[#allocation5 + $0x168] sm:$0xff] %v557_v62 }
 0x1b1   :  { %v251_v63 = vpop.f32.mrf.mxu1  ;;  %v559_v0 = vpop.f32.mrf.mxu0 }
 0x1b2   :  { %1676 = vst [vmem:[#allocation5 + $0x130] sm:$0xff] %v251_v63  ;;  %1684 = vst [vmem:[#allocation5 + $0x170] sm:$0xff] %v559_v0 }
 0x1b3   :  { %v320_v1 = vpop.f32.mrf.mxu1  ;;  %v705_v2 = vpop.f32.mrf.mxu0 }
 0x1b4   :  { %1640 = vst [vmem:[#allocation5 + $0x10] sm:$0xff] %v320_v1  ;;  %1650 = vst [vmem:[#allocation5 + $0x60] sm:$0xff] %v705_v2 }
 0x1b5   :  { %v322_v3 = vpop.f32.mrf.mxu1  ;;  %v707_v4 = vpop.f32.mrf.mxu0 }
 0x1b6   :  { %1641 = vst [vmem:[#allocation5 + $0x18] sm:$0xff] %v322_v3  ;;  %1651 = vst [vmem:[#allocation5 + $0x68] sm:$0xff] %v707_v4 }
 0x1b7   :  { %v326_v5 = vpop.f32.mrf.mxu1  ;;  %v711_v6 = vpop.f32.mrf.mxu0 }
 0x1b8   :  { %1677 = vst [vmem:[#allocation5 + $0x138] sm:$0xff] %v326_v5  ;;  %1687 = vst [vmem:[#allocation5 + $0x188] sm:$0xff] %v711_v6 }
 0x1b9   :  { %v328_v7 = vpop.f32.mrf.mxu1  ;;  %v713_v8 = vpop.f32.mrf.mxu0 }
 0x1ba   :  { %1678 = vst [vmem:[#allocation5 + $0x140] sm:$0xff] %v328_v7  ;;  %1688 = vst [vmem:[#allocation5 + $0x190] sm:$0xff] %v713_v8 }
 0x1bb   :  { %v397_v9 = vpop.f32.mrf.mxu1  ;;  %v859_v10 = vpop.f32.mrf.mxu0 }
 0x1bc   :  { %1642 = vst [vmem:[#allocation5 + $0x20] sm:$0xff] %v397_v9  ;;  %1654 = vst [vmem:[#allocation5 + $0x80] sm:$0xff] %v859_v10 }
 0x1bd   :  { %v399_v11 = vpop.f32.mrf.mxu1  ;;  %v861_v12 = vpop.f32.mrf.mxu0 }
 0x1be   :  { %1643 = vst [vmem:[#allocation5 + $0x28] sm:$0xff] %v399_v11  ;;  %1655 = vst [vmem:[#allocation5 + $0x88] sm:$0xff] %v861_v12 }
 0x1bf   :  { %v403_v13 = vpop.f32.mrf.mxu1  ;;  %v865_v14 = vpop.f32.mrf.mxu0 }
 0x1c0   :  { %1679 = vst [vmem:[#allocation5 + $0x148] sm:$0xff] %v403_v13  ;;  %1691 = vst [vmem:[#allocation5 + $0x1a8] sm:$0xff] %v865_v14 }
 0x1c1   :  { %v405_v15 = vpop.f32.mrf.mxu1  ;;  %v867_v16 = vpop.f32.mrf.mxu0 }
 0x1c2   :  { %1680 = vst [vmem:[#allocation5 + $0x150] sm:$0xff] %v405_v15  ;;  %1692 = vst [vmem:[#allocation5 + $0x1b0] sm:$0xff] %v867_v16 }
 0x1c3   :  { %v474_v17 = vpop.f32.mrf.mxu1  ;;  %v1013_v18 = vpop.f32.mrf.mxu0 }
 0x1c4   :  { %1644 = vst [vmem:[#allocation5 + $0x30] sm:$0xff] %v474_v17  ;;  %1658 = vst [vmem:[#allocation5 + $0xa0] sm:$0xff] %v1013_v18 }
 0x1c5   :  { %v476_v19 = vpop.f32.mrf.mxu1  ;;  %v1015_v20 = vpop.f32.mrf.mxu0 }
 0x1c6   :  { %1645 = vst [vmem:[#allocation5 + $0x38] sm:$0xff] %v476_v19  ;;  %1659 = vst [vmem:[#allocation5 + $0xa8] sm:$0xff] %v1015_v20 }
 0x1c7   :  { %v480_v21 = vpop.f32.mrf.mxu1  ;;  %v1019_v22 = vpop.f32.mrf.mxu0 }
 0x1c8   :  { %1681 = vst [vmem:[#allocation5 + $0x158] sm:$0xff] %v480_v21  ;;  %1695 = vst [vmem:[#allocation5 + $0x1c8] sm:$0xff] %v1019_v22 }
 0x1c9   :  { %v482_v23 = vpop.f32.mrf.mxu1  ;;  %v1021_v24 = vpop.f32.mrf.mxu0 }
 0x1ca   :  { %1682 = vst [vmem:[#allocation5 + $0x160] sm:$0xff] %v482_v23  ;;  %1696 = vst [vmem:[#allocation5 + $0x1d0] sm:$0xff] %v1021_v24 }
 0x1cb   :  { %v628_v25 = vpop.f32.mrf.mxu1  ;;  %v1167_v26 = vpop.f32.mrf.mxu0 }
 0x1cc   :  { %1648 = vst [vmem:[#allocation5 + $0x50] sm:$0xff] %v628_v25  ;;  %1662 = vst [vmem:[#allocation5 + $0xc0] sm:$0xff] %v1167_v26 }
 0x1cd   :  { %v630_v27 = vpop.f32.mrf.mxu1  ;;  %v1169_v28 = vpop.f32.mrf.mxu0 }
 0x1ce   :  { %1649 = vst [vmem:[#allocation5 + $0x58] sm:$0xff] %v630_v27  ;;  %1663 = vst [vmem:[#allocation5 + $0xc8] sm:$0xff] %v1169_v28 }
 0x1cf   :  { %v634_v29 = vpop.f32.mrf.mxu1  ;;  %v1173_v30 = vpop.f32.mrf.mxu0 }
 0x1d0   :  { %1685 = vst [vmem:[#allocation5 + $0x178] sm:$0xff] %v634_v29  ;;  %1699 = vst [vmem:[#allocation5 + $0x1e8] sm:$0xff] %v1173_v30 }
 0x1d1   :  { %v636_v31 = vpop.f32.mrf.mxu1  ;;  %v1175_v32 = vpop.f32.mrf.mxu0 }
 0x1d2   :  { %1686 = vst [vmem:[#allocation5 + $0x180] sm:$0xff] %v636_v31  ;;  %1700 = vst [vmem:[#allocation5 + $0x1f0] sm:$0xff] %v1175_v32 }
 0x1d3   :  { %v782_v33 = vpop.f32.mrf.mxu1  ;;  %v1321_v34 = vpop.f32.mrf.mxu0 }
 0x1d4   :  { %1652 = vst [vmem:[#allocation5 + $0x70] sm:$0xff] %v782_v33  ;;  %1666 = vst [vmem:[#allocation5 + $0xe0] sm:$0xff] %v1321_v34 }
 0x1d5   :  { %v784_v35 = vpop.f32.mrf.mxu1  ;;  %v1323_v36 = vpop.f32.mrf.mxu0 }
 0x1d6   :  { %1653 = vst [vmem:[#allocation5 + $0x78] sm:$0xff] %v784_v35  ;;  %1667 = vst [vmem:[#allocation5 + $0xe8] sm:$0xff] %v1323_v36 }
 0x1d7   :  { %v788_v37 = vpop.f32.mrf.mxu1  ;;  %v1327_v38 = vpop.f32.mrf.mxu0 }
 0x1d8   :  { %1689 = vst [vmem:[#allocation5 + $0x198] sm:$0xff] %v788_v37  ;;  %1703 = vst [vmem:[#allocation5 + $0x208] sm:$0xff] %v1327_v38 }
 0x1d9   :  { %v790_v39 = vpop.f32.mrf.mxu1  ;;  %v1329_v40 = vpop.f32.mrf.mxu0 }
 0x1da   :  { %1690 = vst [vmem:[#allocation5 + $0x1a0] sm:$0xff] %v790_v39  ;;  %1704 = vst [vmem:[#allocation5 + $0x210] sm:$0xff] %v1329_v40 }
 0x1db   :  { %v936_v41 = vpop.f32.mrf.mxu1  ;;  %v1475_v42 = vpop.f32.mrf.mxu0 }
 0x1dc   :  { %1656 = vst [vmem:[#allocation5 + $0x90] sm:$0xff] %v936_v41  ;;  %1670 = vst [vmem:[#allocation5 + $0x100] sm:$0xff] %v1475_v42 }
 0x1dd   :  { %v938_v43 = vpop.f32.mrf.mxu1  ;;  %v1477_v44 = vpop.f32.mrf.mxu0 }
 0x1de   :  { %1657 = vst [vmem:[#allocation5 + $0x98] sm:$0xff] %v938_v43  ;;  %1671 = vst [vmem:[#allocation5 + $0x108] sm:$0xff] %v1477_v44 }
 0x1df   :  { %v942_v45 = vpop.f32.mrf.mxu1  ;;  %v1481_v46 = vpop.f32.mrf.mxu0 }
 0x1e0   :  { %1693 = vst [vmem:[#allocation5 + $0x1b8] sm:$0xff] %v942_v45  ;;  %1707 = vst [vmem:[#allocation5 + $0x228] sm:$0xff] %v1481_v46 }
 0x1e1   :  { %v944_v47 = vpop.f32.mrf.mxu1  ;;  %v1483_v48 = vpop.f32.mrf.mxu0 }
 0x1e2   :  { %1694 = vst [vmem:[#allocation5 + $0x1c0] sm:$0xff] %v944_v47  ;;  %1708 = vst [vmem:[#allocation5 + $0x230] sm:$0xff] %v1483_v48 }
 0x1e3   :  { %v1090_v49 = vpop.f32.mrf.mxu1  ;;  %v1818_v50 = vpop.f32.mrf.mxu0 }
 0x1e4   :  { %1660 = vst [vmem:[#allocation5 + $0xb0] sm:$0xff] %v1090_v49  ;;  %1711 = vst [vmem:[#allocation5 + $0x248] sm:$0xff] %v1818_v50 }
 0x1e5   :  { %v1092_v51 = vpop.f32.mrf.mxu1  ;;  %v1629_v52 = vpop.f32.mrf.mxu0 }
 0x1e6   :  { %1661 = vst [vmem:[#allocation5 + $0xb8] sm:$0xff] %v1092_v51  ;;  %1674 = vst [vmem:[#allocation5 + $0x120] sm:$0xff] %v1629_v52 }
 0x1e7   :  { %v1096_v53 = vpop.f32.mrf.mxu1 }
 0x1e8   :  { %1697 = vst [vmem:[#allocation5 + $0x1d8] sm:$0xff] %v1096_v53 }
 0x1e9   :  { %v1098_v54 = vpop.f32.mrf.mxu1 }
 0x1ea   :  { %1698 = vst [vmem:[#allocation5 + $0x1e0] sm:$0xff] %v1098_v54 }
 0x1eb   :  { %v1244_v55 = vpop.f32.mrf.mxu1 }
 0x1ec   :  { %1664 = vst [vmem:[#allocation5 + $0xd0] sm:$0xff] %v1244_v55 }
 0x1ed   :  { %v1246_v56 = vpop.f32.mrf.mxu1 }
 0x1ee   :  { %1665 = vst [vmem:[#allocation5 + $0xd8] sm:$0xff] %v1246_v56 }
 0x1ef   :  { %v1250_v57 = vpop.f32.mrf.mxu1 }
 0x1f0   :  { %1701 = vst [vmem:[#allocation5 + $0x1f8] sm:$0xff] %v1250_v57 }
 0x1f1   :  { %v1252_v58 = vpop.f32.mrf.mxu1 }
 0x1f2   :  { %1702 = vst [vmem:[#allocation5 + $0x200] sm:$0xff] %v1252_v58 }
 0x1f3   :  { %v1398_v59 = vpop.f32.mrf.mxu1 }
 0x1f4   :  { %1668 = vst [vmem:[#allocation5 + $0xf0] sm:$0xff] %v1398_v59 }
 0x1f5   :  { %v1400_v60 = vpop.f32.mrf.mxu1 }
 0x1f6   :  { %1669 = vst [vmem:[#allocation5 + $0xf8] sm:$0xff] %v1400_v60 }
 0x1f7   :  { %v1404_v61 = vpop.f32.mrf.mxu1 }
 0x1f8   :  { %1705 = vst [vmem:[#allocation5 + $0x218] sm:$0xff] %v1404_v61 }
 0x1f9   :  { %v1406_v62 = vpop.f32.mrf.mxu1 }
 0x1fa   :  { %1706 = vst [vmem:[#allocation5 + $0x220] sm:$0xff] %v1406_v62 }
 0x1fb   :  { %v1552_v63 = vpop.f32.mrf.mxu1 }
 0x1fc   :  { %1672 = vst [vmem:[#allocation5 + $0x110] sm:$0xff] %v1552_v63 }
 0x1fd   :  { %v1554_v0 = vpop.f32.mrf.mxu1 }
 0x1fe   :  { %1673 = vst [vmem:[#allocation5 + $0x118] sm:$0xff] %v1554_v0 }
 0x1ff   :  { %v1558_v1 = vpop.f32.mrf.mxu1 }
 0x200   :  { %1709 = vst [vmem:[#allocation5 + $0x238] sm:$0xff] %v1558_v1 }
 0x201   :  { %v1560_v2 = vpop.f32.mrf.mxu1 }
 0x202   :  { %1710 = vst [vmem:[#allocation5 + $0x240] sm:$0xff] %v1560_v2 }
 0x203   :  { %1855 = shalt.err (!%p1852_p9)
}
 0x204   :  { %s1871_s23 = smov 4736   ;;  %s1872_s24 = smov 296  }
 0x205   :  { %1723 = dma.vmem_to_hbm [thread:$0]  %s1718_s21, 9472, %s2071_s4, [#allocation4], %s1871_s23, %s1871_s23, %s1872_s24  }
 0x206   :  { %1866 = dma.done.wait [#allocation4], 9472  }
 0x207   :  { %1867 = vsyncadd [#allocation4], 4294957824 }
 0x208   :  { %1727 = vsyncpa [#allocation3], 1 }
 0x209   :  { %1728 = vsyncpa [#allocation4], 1 }

</bundles_post_ra>
